<compile_context>
chip_gen: v6e
topology: v6e:2x2x1
jax: 0.10.0
libtpu: 0.0.40
codegen_flags: <defaults>
</compile_context>

<pallas_src>
import math

import jax
import jax.numpy as jnp
from jax.experimental import pallas as pl
from jax.experimental.pallas import tpu as pltpu


def _round_up(x, m):
    return ((x + m - 1) // m) * m


def _device_vmem_bytes():
    try:
        info = pltpu.get_tpu_info()
        cap = getattr(info, "vmem_capacity_bytes", None)
        if cap:
            return int(cap)
    except Exception:
        pass
    return 64 << 20  # conservative default that fits every TPU generation


def _sublane(itemsize):
    # rows packed per sublane: f32 -> 8, bf16 -> 16, int8/fp8 -> 32
    return {4: 8, 2: 16, 1: 32}.get(itemsize, 8)


def _select_tiles(M, K, vocab, xb, wb, ob, vmem_cap, sublane):
    """Pick (tm, tn, Mp, Vp) given the device VMEM capacity and dtypes."""
    # Generation-appropriate targets (weight-streaming roofline ridge).
    if vmem_cap >= (100 << 20):          # v5e / v6e: 128 MiB VMEM
        tm_t, tn_t = 1024, 512
    else:                                # v7x: 64 MiB per TensorCore
        tm_t, tn_t = 512, (256 if K >= 8192 else 512)

    budget = int(vmem_cap * 0.7)

    def footprint(tm_, tn_):
        # double-buffered inputs/outputs + f32 bias tile
        return 2 * (tm_ * K * xb + tn_ * K * wb + tn_ * 4 + tm_ * tn_ * ob)

    while footprint(tm_t, tn_t) > budget and tm_t > 2 * sublane:
        tm_t //= 2
    while footprint(tm_t, tn_t) > budget and tn_t > 128:
        tn_t //= 2

    # Token tile: prefer one that divides the sublane-rounded token count so no
    # padding / post-kernel row slice is needed.
    Mp = _round_up(M, sublane)
    tm_eff = None
    cand = (min(tm_t, Mp) // sublane) * sublane
    while cand >= sublane:
        if Mp % cand == 0:
            tm_eff = cand
            break
        cand -= sublane
    if tm_eff is None or (Mp > tm_t and tm_eff < min(tm_t, 256)):
        # No decent divisor: pad the token dim rather than using a tiny tile.
        # TODO(synk): the trailing out[:M] slice re-copies the logits; callers
        # with awkward token counts should pad batch*seq themselves.
        tm_eff = tm_t
        Mp = _round_up(M, tm_eff)

    # Vocab tile: a multiple of 128 that divides vocab (no weight/bias padding).
    tn_eff, Vp = None, vocab
    if vocab % 128 == 0:
        cand = (min(tn_t, vocab) // 128) * 128
        while cand >= 128:
            if vocab % cand == 0:
                tn_eff = cand
                break
            cand -= 128
    if tn_eff is None:
        # TODO(synk): vocab not a multiple of 128 -- fall back to per-call
        # padding; real deployments should pad the head weight once at init.
        tn_eff = min(tn_t, _round_up(vocab, 128))
        Vp = _round_up(vocab, tn_eff)

    return tm_eff, tn_eff, Mp, Vp


def _make_lm_head_kernel(precision):
    def _lm_head_kernel(x_ref, w_ref, b_ref, o_ref):
        # x_ref: (tm, K) activations; w_ref: (K, tn) pre-transposed weight;
        # b_ref: (1, tn) f32 bias; o_ref: (tm, tn) logits.
        acc = jnp.dot(x_ref[...], w_ref[...],
                      preferred_element_type=jnp.float32, precision=precision)
        o_ref[...] = (acc + b_ref[...]).astype(o_ref.dtype)
    return _lm_head_kernel


def linear_lm_head(inputs, weight, bias, *, operand_dtype=None, out_dtype=None,
                   weight_is_transposed=False, vmem_limit_bytes=None):
    """inputs: (batch, seq, embed); weight: (vocab, embed) torch layout (or
    (embed, vocab) if weight_is_transposed); bias: (vocab,)."""
    batch, seq, embed = inputs.shape
    if weight_is_transposed:
        embed_w, vocab = weight.shape
    else:
        vocab, embed_w = weight.shape
    assert embed_w == embed, "weight must match embedding_dim"
    assert bias.shape == (vocab,)

    out_dtype = out_dtype or inputs.dtype

    x = inputs.reshape(batch * seq, embed)
    w = weight
    if operand_dtype is not None:
        x = x.astype(operand_dtype)
        w = w.astype(operand_dtype)
    if not weight_is_transposed:
        # One HBM pass over the weight; removes any per-step XLU transpose of a
        # (tn, K) tile inside the kernel.
        # TODO(synk): production callers should store the LM-head weight as
        # (embed, vocab) so this per-call transpose disappears entirely.
        w = w.T
    b = bias.astype(jnp.float32).reshape(1, vocab)   # pre-cast bias once

    M, K = x.shape
    xb = jnp.dtype(x.dtype).itemsize
    wb = jnp.dtype(w.dtype).itemsize
    ob = jnp.dtype(out_dtype).itemsize

    vmem_cap = _device_vmem_bytes()
    sublane = _sublane(xb)
    tm, tn, Mp, Vp = _select_tiles(M, K, vocab, xb, wb, ob, vmem_cap, sublane)

    if Mp != M:
        x = jnp.pad(x, ((0, Mp - M), (0, 0)))
    if Vp != vocab:  # rare fallback path only (vocab not a multiple of 128)
        w = jnp.pad(w, ((0, 0), (0, Vp - vocab)))
        b = jnp.pad(b, ((0, 0), (0, Vp - vocab)))

    n_m, n_v = Mp // tm, Vp // tn
    grid = (n_m, n_v)  # vocab innermost: activation tile stays resident

    # Deeper weight buffering in the memory-bound (few token tiles) regime on
    # 128 MiB parts; skipped on v7x's 64 MiB VMEM.
    deep_w = (
        n_m <= 2
        and vmem_cap >= (100 << 20)
        and (2 * tm * K * xb + 3 * tn * K * wb + 2 * (tm * tn * ob + tn * 4))
            < int(vmem_cap * 0.7)
    )
    w_bufs = 3 if deep_w else 2

    wanted = (2 * (tm * K * xb + tm * tn * ob + tn * 4)
              + w_bufs * tn * K * wb + (8 << 20))
    vmem_limit = vmem_limit_bytes or int(
        min(max(wanted, 32 << 20), vmem_cap - (8 << 20)))

    cost = pl.CostEstimate(
        flops=2 * Mp * K * Vp,
        # activations streamed once; weight/bias re-streamed per token tile
        bytes_accessed=int(Mp * K * xb + n_m * Vp * (K * wb + 4) + Mp * Vp * ob),
        transcendentals=0,
    )

    precision = (jax.lax.Precision.HIGHEST
                 if x.dtype == jnp.float32 and w.dtype == jnp.float32 else None)
    kernel = _make_lm_head_kernel(precision)

    def _call(w_spec):
        return pl.pallas_call(
            kernel,
            out_shape=jax.ShapeDtypeStruct((Mp, Vp), out_dtype),
            grid_spec=pltpu.PrefetchScalarGridSpec(
                num_scalar_prefetch=0,
                grid=grid,
                in_specs=[
                    pl.BlockSpec((tm, K), lambda i, j: (i, 0)),    # activations
                    w_spec,                                        # (K, tn) weight
                    pl.BlockSpec((1, tn), lambda i, j: (0, j)),    # f32 bias
                ],
                out_specs=pl.BlockSpec((tm, tn), lambda i, j: (i, j)),
            ),
            compiler_params=pltpu.CompilerParams(
                dimension_semantics=("parallel", "parallel"),  # no reduction axis
                vmem_limit_bytes=vmem_limit,
            ),
            cost_estimate=cost,
        )(x, w, b)

    base_w_spec = pl.BlockSpec((K, tn), lambda i, j: (0, j))
    if deep_w:
        try:
            out = _call(pl.BlockSpec((K, tn), lambda i, j: (0, j),
                                     pipeline_mode=pl.Buffered(3)))
        except Exception:
            out = _call(base_w_spec)
    else:
        out = _call(base_w_spec)

    if Mp != M or Vp != vocab:
        out = out[:M, :vocab]
    return out.reshape(batch, seq, vocab)


if __name__ == "__main__":
    # Small shapes consistent with the module's forward.
    batch, seq, embedding_dim, vocab_size = 2, 8, 32, 256

    key = jax.random.PRNGKey(0)
    k_in, k_w = jax.random.split(key)

    inputs = jax.random.normal(k_in, (batch, seq, embedding_dim), dtype=jnp.float32)

    # Deterministic parameter init matching the module's __init__:
    #   xavier_normal_ on weight (shape (vocab_size, embedding_dim)), bias = 0.
    xavier_std = math.sqrt(2.0 / (embedding_dim + vocab_size))
    weight = xavier_std * jax.random.normal(
        k_w, (vocab_size, embedding_dim), dtype=jnp.float32
    )
    bias = jnp.zeros((vocab_size,), dtype=jnp.float32)

    ref = inputs @ weight.T + bias

    # 1) f32 path (HIGHEST precision matmul) -- tight semantic check.
    out = jax.block_until_ready(linear_lm_head(inputs, weight, bias))
    assert out.shape == (batch, seq, vocab_size)
    assert jnp.allclose(out, ref, atol=1e-4, rtol=1e-4)

    # 2) bf16-operand fast path (production default for f32 params): f32
    #    accumulation keeps the logits close to the f32 reference.
    out_bf16 = jax.block_until_ready(
        linear_lm_head(inputs, weight, bias,
                       operand_dtype=jnp.bfloat16, out_dtype=jnp.float32))
    assert out_bf16.shape == (batch, seq, vocab_size)
    assert jnp.allclose(out_bf16, ref, atol=5e-2, rtol=5e-2)

    print("KERNEL_OK")
</pallas_src>

<mosaic_0001>
module attributes {stable_mosaic.version = 11 : i64} {
  func.func @_lm_head_kernel(%arg0: i32, %arg1: i32, %arg2: memref<16x32xf32, #tpu.memory_space<vmem>>, %arg3: memref<32x256xf32, #tpu.memory_space<vmem>>, %arg4: memref<1x256xf32, #tpu.memory_space<vmem>>, %arg5: memref<16x256xf32, #tpu.memory_space<vmem>>) attributes {dimension_semantics = [#tpu.dimension_semantics<parallel>, #tpu.dimension_semantics<parallel>], iteration_bounds = array<i64: 1, 1>, scalar_prefetch = 0 : i64, scratch_operands = 0 : i64, tpu.core_type = #tpu.core_type<tc>, window_params = [{transform_indices = @transform_0, window_bounds = array<i64: 16, 32>}, {transform_indices = @transform_1, window_bounds = array<i64: 32, 256>}, {transform_indices = @transform_2, window_bounds = array<i64: 1, 256>}, {transform_indices = @transform_3, window_bounds = array<i64: 16, 256>}]} {
    %c0 = arith.constant 0 : index
    %c0_0 = arith.constant 0 : index
    %0 = vector.load %arg2[%c0, %c0_0] : memref<16x32xf32, #tpu.memory_space<vmem>>, vector<16x32xf32>
    %c0_1 = arith.constant 0 : index
    %c0_2 = arith.constant 0 : index
    %1 = vector.load %arg3[%c0_1, %c0_2] : memref<32x256xf32, #tpu.memory_space<vmem>>, vector<32x256xf32>
    %cst = arith.constant dense<0.000000e+00> : vector<16x256xf32>
    %2 = tpu.matmul %0, %1, %cst {dimension_numbers = #tpu.dot_dimension_numbers<[1], [0], [0], [1], [0, 0, 1, 1], [], []>, precision = #tpu.contract_precision<fp32>} : vector<16x32xf32>, vector<32x256xf32>, vector<16x256xf32> -> vector<16x256xf32>
    %c0_3 = arith.constant 0 : index
    %c0_4 = arith.constant 0 : index
    %3 = vector.load %arg4[%c0_3, %c0_4] : memref<1x256xf32, #tpu.memory_space<vmem>>, vector<1x256xf32>
    %4 = vector.broadcast %3 : vector<1x256xf32> to vector<16x256xf32>
    %5 = arith.addf %2, %4 : vector<16x256xf32>
    %c0_5 = arith.constant 0 : index
    %c0_6 = arith.constant 0 : index
    %6 = vector.load %arg5[%c0_5, %c0_6] : memref<16x256xf32, #tpu.memory_space<vmem>>, vector<16x256xf32>
    tpu.vector_store %arg5[%c0_5, %c0_6], %5 {strides = array<i32>} : memref<16x256xf32, #tpu.memory_space<vmem>>, vector<16x256xf32>,
    return
  }
  func.func @transform_0(%arg0: i32, %arg1: i32) -> (i32, i32) {
    %c0_i32 = arith.constant 0 : i32
    %c0_i32_0 = arith.constant 0 : i32
    return %arg0, %c0_i32 : i32, i32
  }
  func.func @transform_1(%arg0: i32, %arg1: i32) -> (i32, i32) {
    %c0_i32 = arith.constant 0 : i32
    %c0_i32_0 = arith.constant 0 : i32
    return %c0_i32, %arg1 : i32, i32
  }
  func.func @transform_2(%arg0: i32, %arg1: i32) -> (i32, i32) {
    %c0_i32 = arith.constant 0 : i32
    %c0_i32_0 = arith.constant 0 : i32
    return %c0_i32, %arg1 : i32, i32
  }
  func.func @transform_3(%arg0: i32, %arg1: i32) -> (i32, i32) {
    %c0_i32 = arith.constant 0 : i32
    return %arg0, %arg1 : i32, i32
  }
}

</mosaic_0001>

<bundles_post_ra>
// kernel: tpu_custom_call.1
= control target key start
LH: loop header
LB: loop body
LE: loop exit
PB: predicated region body
PF: predicated region fallthrough
CT: control target
= control target key end

     0   :  { %8 = vsyncpa [#allocation3], 0  ;;  %s944_s0 = inlined_call_operand.hbm [shape: f32[16,32], index: 0, kind: input, shape index: {}]   ;;  %s945_s1 = inlined_call_operand.hbm [shape: f32[32,256], index: 1, kind: input, shape index: {}]   ;;  %s946_s2 = inlined_call_operand.vmem [shape: f32[1,256], index: 2, kind: input, shape index: {}]   ;;  %s947_s3 = inlined_call_operand.hbm [shape: f32[16,256], index: 3, kind: output, shape index: {}]  }
   0x1   :  { %9 = vsyncpa [#allocation6], 0 }
   0x2   :  { %10 = vsyncpa [#allocation4], 0  ;;  %s760_s12 = smov [#allocation2]  }
   0x3   :  { %s16_s13 = sshll.u32 %s760_s12, 4  ;;  %s17_s13 = int_to_ptr.vmem [resolvable:$true] %s16_s13 }
   0x4   :  { %s702_s14 = scalar_lea.vmem %s17_s13, 256  ;;  %p707_p1 = scmp.lt.s32.totalorder %s17_s13, %s17_s13 }
   0x5   :  { %p703_p0 = scmp.ne.s32.totalorder %s17_s13, %s702_s14  ;;  %p708_p2 = scmp.lt.s32.totalorder %s702_s14, %s702_s14 }
   0x7   :  { %p709_p3 = por %p708_p2, %p707_p1 }
   0x9   :  { %p710_p4 = pnand %p709_p3, %p703_p0 }
   0xb   :  { %713 = shalt.err (!%p710_p4)
}
   0xc   :  { %s761_s15 = smov 128   ;;  %s762_s16 = smov 8  }
   0xd   :  { %22 = dma.hbm_to_vmem [thread:$0]  %s944_s0, 256, %s17_s13, [#allocation3], %s761_s15, %s761_s15, %s762_s16  }
   0xe   :  { %s763_s19 = smov [#allocation5]  }
   0xf   :  { %s28_s20 = sshll.u32 %s763_s19, 4  ;;  %s29_s20 = int_to_ptr.vmem [resolvable:$true] %s28_s20 }
  0x10   :  { %s722_s21 = scalar_lea.vmem %s29_s20, 1024  ;;  %p727_p6 = scmp.lt.s32.totalorder %s29_s20, %s29_s20 }
  0x11   :  { %p723_p5 = scmp.ne.s32.totalorder %s29_s20, %s722_s21  ;;  %p728_p7 = scmp.lt.s32.totalorder %s722_s21, %s722_s21 }
  0x13   :  { %p729_p8 = por %p728_p7, %p727_p6 }
  0x15   :  { %p730_p9 = pnand %p729_p8, %p723_p5 }
  0x17   :  { %733 = shalt.err (!%p730_p9)
}
  0x18   :  { %s764_s22 = smov 256   ;;  %s765_s23 = smov 16  }
  0x19   :  { %34 = dma.hbm_to_vmem [thread:$0]  %s945_s1, 1024, %s29_s20, [#allocation6], %s764_s22, %s764_s22, %s765_s23  }
  0x1a   :  { %754 = dma.done.wait [#allocation3], 256  }
  0x1b   :  { %755 = vsyncadd [#allocation3], 4294967040 }
  0x1c   :  { %756 = dma.done.wait [#allocation6], 1024  }
  0x1d   :  { %757 = vsyncadd [#allocation6], 4294966272  ;;  %v766_v0 = vmov 0.0   ;;  %v52_v1 = vld [vmem:[#allocation5 + $0x38] sm:$0xff]  ;;  %v51_v2 = vld [vmem:[#allocation5 + $0x30] sm:$0xff]  ;;  %vm65_vm0 = vcmask 261120   ;;  %v55_v63 = vlaneseq }
  0x1e   :  { %144 = vmatprep.mubr.f32.mxu0 %v766_v0  ;;  %271 = vmatprep.mubr.f32.mxu1 %v766_v0  ;;  %v50_v3 = vld [vmem:[#allocation5 + $0x28] sm:$0xff]  ;;  %v799_v4 = vand.u32 4294901760, %v52_v1  ;;  %v801_v5 = vand.u32 4294901760, %v51_v2  ;;  %v49_v7 = vld [vmem:[#allocation5 + $0x20] sm:$0xff]  ;;  %v48_v8 = vld [vmem:[#allocation5 + $0x18] sm:$0xff] }
  0x1f   :  { %v803_v6 = vand.u32 4294901760, %v50_v3  ;;  %v47_v9 = vld [vmem:[#allocation5 + $0x10] sm:$0xff]  ;;  %v805_v10 = vand.u32 4294901760, %v49_v7  ;;  %v807_v11 = vand.u32 4294901760, %v48_v8  ;;  %v46_v13 = vld [vmem:[#allocation5 + $0x8] sm:$0xff]  ;;  %v45_v14 = vld [vmem:[#allocation5] sm:$0xff] }
  0x20   :  { %v809_v12 = vand.u32 4294901760, %v47_v9  ;;  %v43_v15 = vld [vmem:[#allocation2] sm:$0xff]  ;;  %97 = vmatprep.subr.mxu0 %v799_v4  ;;  %v812_v16 = vand.u32 4294901760, %v46_v13  ;;  %v815_v17 = vsub.f32 %v52_v1, %v799_v4  ;;  %v817_v18 = vand.u32 4294901760, %v45_v14  ;;  %v44_v20 = vld [vmem:[#allocation2 + $0x8] sm:$0xff] }
  0x21   :  { %v820_v19 = vsub.f32 %v51_v2, %v801_v5  ;;  %99 = vmatpush1.msra.mxu0 %v801_v5  ;;  %v67_v21 = vsel %vm65_vm0, %v43_v15, 0  ;;  %v825_v22 = vsub.f32 %v50_v3, %v803_v6  ;;  %v828_v23 = vsub.f32 %v49_v7, %v805_v10 }
  0x22   :  { %v831_v24 = vsub.f32 %v48_v8, %v807_v11  ;;  %101 = vmatprep.subr.mxu0 %v803_v6  ;;  %v193_v25 = vand.u32 4294901760, %v815_v17  ;;  %v836_v27 = vand.u32 4294901760, %v67_v21  ;;  %v839_v28 = vsub.f32 %v47_v9, %v809_v12 }
  0x23   :  { %v199_v26 = vand.u32 4294901760, %v820_v19  ;;  %103 = vmatpush1.msra.mxu0 %v805_v10  ;;  %v205_v29 = vand.u32 4294901760, %v825_v22  ;;  %v211_v30 = vand.u32 4294901760, %v828_v23  ;;  %v70_v32 = vsel %vm65_vm0, %v44_v20, 0 }
  0x24   :  { %v217_v31 = vand.u32 4294901760, %v831_v24  ;;  %105 = vmatprep.subr.mxu0 %v807_v11  ;;  %v194_v33 = vsub.f32 %v815_v17, %v193_v25  ;;  %v854_v35 = vsub.f32 %v67_v21, %v836_v27  ;;  %v223_v36 = vand.u32 4294901760, %v839_v28 }
  0x25   :  { %v200_v34 = vsub.f32 %v820_v19, %v199_v26  ;;  %107 = vmatpush1.msra.mxu0 %v809_v12  ;;  %v206_v37 = vsub.f32 %v825_v22, %v205_v29  ;;  %v212_v38 = vsub.f32 %v828_v23, %v211_v30  ;;  %v867_v40 = vand.u32 4294901760, %v70_v32 }
  0x26   :  { %v218_v39 = vsub.f32 %v831_v24, %v217_v31  ;;  %109 = vmatprep.subr.mxu0 %v812_v16  ;;  %v195_v41 = vand.u32 4294901760, %v194_v33  ;;  %v147_v43 = vand.u32 4294901760, %v854_v35  ;;  %v224_v44 = vsub.f32 %v839_v28, %v223_v36 }
  0x27   :  { %v201_v42 = vand.u32 4294901760, %v200_v34  ;;  %111 = vmatpush1.msra.mxu0 %v817_v18  ;;  %v207_v45 = vand.u32 4294901760, %v206_v37  ;;  %v213_v46 = vand.u32 4294901760, %v212_v38  ;;  %v876_v47 = vsub.f32 %v70_v32, %v867_v40 }
  0x28   :  { %196 = vmatprep.subr.mxu1 %v195_v41  ;;  %v148_v48 = vsub.f32 %v854_v35, %v147_v43  ;;  %312 = vmatprep.subr.mxu0 %v815_v17  ;;  %v219_v49 = vand.u32 4294901760, %v218_v39  ;;  %v228_v50 = vsub.f32 %v46_v13, %v812_v16  ;;  %v234_v51 = vsub.f32 %v45_v14, %v817_v18 }
  0x29   :  { %202 = vmatpush1.msra.mxu1 %v201_v42  ;;  %v158_v52 = vand.u32 4294901760, %v876_v47  ;;  %v225_v54 = vand.u32 4294901760, %v224_v44  ;;  %v56_v2 = vshrl.u32 %v55_v63, 7 }
  0x2a   :  { %v149_v53 = vand.u32 4294901760, %v148_v48  ;;  %208 = vmatprep.subr.mxu1 %v207_v45  ;;  %v229_v55 = vand.u32 4294901760, %v228_v50  ;;  %v235_v56 = vand.u32 4294901760, %v234_v51 }
  0x2b   :  { %214 = vmatpush1.msra.mxu1 %v213_v46  ;;  %v159_v57 = vsub.f32 %v876_v47, %v158_v52 }
  0x2c   :  { %150 = vmatmul.mubr.f32.vlgmr.msra.gmra.mxu0 %v149_v53  ;;  %220 = vmatprep.subr.mxu1 %v219_v49  ;;  %v230_v58 = vsub.f32 %v228_v50, %v229_v55  ;;  %v236_v59 = vsub.f32 %v234_v51, %v235_v56 }
  0x2d   :  { %315 = vmatpush1.msra.mxu0 %v820_v19  ;;  %155 = vmatprep.mubr.f32.mxu0 %v766_v0  ;;  %v160_v60 = vand.u32 4294901760, %v159_v57 }
  0x2e   :  { %318 = vmatprep.subr.mxu0 %v825_v22  ;;  %226 = vmatpush1.msra.mxu1 %v225_v54  ;;  %v231_v61 = vand.u32 4294901760, %v230_v58  ;;  %v237_v62 = vand.u32 4294901760, %v236_v59 }
  0x2f   :  { %321 = vmatpush1.msra.mxu0 %v828_v23 }
  0x30   :  { %161 = vmatmul.mubr.f32.gmra.mxu0 %v160_v60  ;;  %232 = vmatprep.subr.mxu1 %v231_v61 }
  0x31   :  { %324 = vmatprep.subr.mxu0 %v831_v24  ;;  %238 = vmatpush1.msra.mxu1 %v237_v62 }
  0x32   :  { %327 = vmatpush1.msra.mxu0 %v839_v28  ;;  %273 = vmatmul.mubr.f32.vlgmr.msra.gmra.mxu1 %v836_v27 }
  0x33   :  { %330 = vmatprep.subr.mxu0 %v228_v50  ;;  %408 = vmatprep.subr.mxu1 %v799_v4 }
  0x34   :  { %333 = vmatpush1.msra.mxu0 %v234_v51  ;;  %366 = vmatprep.mubr.f32.mxu0 %v766_v0 }
  0x35   :  { %410 = vmatpush1.msra.mxu1 %v801_v5  ;;  %369 = vmatmul.mubr.f32.vlgmr.msra.gmra.mxu0 %v854_v35 }
  0x36   :  { %412 = vmatprep.subr.mxu1 %v803_v6  ;;  %501 = vmatprep.subr.mxu0 %v193_v25 }
  0x37   :  { %278 = vmatprep.mubr.f32.mxu1 %v766_v0  ;;  %414 = vmatpush1.msra.mxu1 %v805_v10 }
  0x38   :  { %505 = vmatpush1.msra.mxu0 %v199_v26  ;;  %280 = vmatmul.mubr.f32.gmra.mxu1 %v867_v40 }
  0x39   :  { %416 = vmatprep.subr.mxu1 %v807_v11  ;;  %509 = vmatprep.subr.mxu0 %v205_v29 }
  0x3a   :  { %374 = vmatprep.mubr.f32.mxu0 %v766_v0  ;;  %418 = vmatpush1.msra.mxu1 %v809_v12 }
  0x3b   :  { %513 = vmatpush1.msra.mxu0 %v211_v30  ;;  %420 = vmatprep.subr.mxu1 %v812_v16 }
  0x3c   :  { %377 = vmatmul.mubr.f32.gmra.mxu0 %v876_v47  ;;  %517 = vmatprep.subr.mxu0 %v217_v31 }
  0x3d   :  { %422 = vmatpush1.msra.mxu1 %v817_v18  ;;  %455 = vmatprep.mubr.f32.mxu1 %v766_v0 }
  0x3e   :  { %521 = vmatpush1.msra.mxu0 %v223_v36  ;;  %459 = vmatmul.mubr.f32.vlgmr.msra.gmra.mxu1 %v147_v43 }
  0x3f   :  { %525 = vmatprep.subr.mxu0 %v229_v55  ;;  %602 = vmatprep.subr.mxu1 %v799_v4 }
  0x40   :  { %529 = vmatpush1.msra.mxu0 %v235_v56  ;;  %562 = vmatprep.mubr.f32.mxu0 %v766_v0 }
  0x41   :  { %604 = vmatpush1.msra.mxu1 %v801_v5  ;;  %564 = vmatmul.mubr.f32.vlgmr.msra.gmra.mxu0 %v836_v27  ;;  %v57_v5 = vsub.s32 0, %v56_v2 }
  0x42   :  { %606 = vmatprep.subr.mxu1 %v803_v6  ;;  %464 = vmatprep.mubr.f32.mxu1 %v766_v0  ;;  %v53_v6 = vld [vmem:[%s946_s2] sm:$0x3]  ;;  %s767_s2 = smov [#allocation7]  }
  0x43   :  { %608 = vmatpush1.msra.mxu1 %v805_v10  ;;  %569 = vmatprep.mubr.f32.mxu0 %v766_v0  ;;  %v58_v10 = vrot.slane %v53_v6, %v57_v5  ;;  %s673_s26 = sshll.u32 %s767_s2, 4  ;;  %s674_s26 = int_to_ptr.vmem [resolvable:$true] %s673_s26 }
  0x44   :  { %468 = vmatmul.mubr.f32.gmra.mxu1 %v158_v52  ;;  %610 = vmatprep.subr.mxu1 %v807_v11  ;;  %v61_v11 = vsub.s32 1, %v56_v2  ;;  %s734_s27 = scalar_lea.vmem %s674_s26, 512  ;;  %p739_p11 = scmp.lt.s32.totalorder %s674_s26, %s674_s26 }
  0x45   :  { %612 = vmatpush1.msra.mxu1 %v809_v12  ;;  %571 = vmatmul.mubr.f32.gmra.mxu0 %v867_v40  ;;  %p735_p10 = scmp.ne.s32.totalorder %s674_s26, %s734_s27  ;;  %p740_p12 = scmp.lt.s32.totalorder %s734_s27, %s734_s27 }
  0x46   :  { %614 = vmatprep.subr.mxu1 %v812_v16  ;;  %649 = vmatprep.mubr.f32.mxu1 %v766_v0  ;;  %v62_v15 = vrot.slane %v53_v6, %v61_v11 }
  0x47   :  { %616 = vmatpush1.msra.mxu1 %v817_v18  ;;  %p741_p13 = por %p740_p12, %p739_p11 }
  0x48   :  { %651 = vmatmul.mubr.f32.vlgmr.msra.gmra.mxu1 %v836_v27 }
  0x49   :  { %656 = vmatprep.mubr.f32.mxu1 %v766_v0  ;;  %p742_p0 = pnand %p741_p13, %p735_p10 }
  0x4c   :  { %658 = vmatmul.mubr.f32.gmra.mxu1 %v867_v40 }
  0xec   :  { %v151_v1 = vpop.f32.mrf.mxu0 }
  0xed   :  { %v152_v14 = vadd.f32 %v151_v1, %v58_v10 }
  0xee   :  { %v153_v3 = vpop.f32.mrf.mxu0 }
  0xef   :  { %v154_v18 = vadd.f32 %v153_v3, %v62_v15 }
  0xf0   :  { %v162_v4 = vpop.f32.mrf.mxu0 }
  0xf1   :  { %v163_v19 = vadd.f32 %v162_v4, %v58_v10 }
  0xf2   :  { %v164_v7 = vpop.f32.mrf.mxu0  ;;  %v274_v8 = vpop.f32.mrf.mxu1 }
  0xf3   :  { %v275_v20 = vadd.f32 %v274_v8, %v152_v14  ;;  %v165_v25 = vadd.f32 %v164_v7, %v62_v15 }
  0xf4   :  { %v276_v9 = vpop.f32.mrf.mxu1 }
  0xf5   :  { %v370_v12 = vpop.f32.mrf.mxu0  ;;  %v277_v23 = vadd.f32 %v276_v9, %v154_v18 }
  0xf6   :  { %v371_v26 = vadd.f32 %v370_v12, %v275_v20 }
  0xf7   :  { %v372_v0 = vpop.f32.mrf.mxu0 }
  0xf8   :  { %v281_v13 = vpop.f32.mrf.mxu1  ;;  %v373_v29 = vadd.f32 %v372_v0, %v277_v23 }
  0xf9   :  { %v282_v27 = vadd.f32 %v281_v13, %v163_v19 }
  0xfa   :  { %v283_v16 = vpop.f32.mrf.mxu1 }
  0xfb   :  { %v284_v30 = vadd.f32 %v283_v16, %v165_v25 }
  0xfc   :  { %v378_v17 = vpop.f32.mrf.mxu0 }
  0xfd   :  { %v379_v34 = vadd.f32 %v378_v17, %v282_v27 }
  0xfe   :  { %v380_v21 = vpop.f32.mrf.mxu0  ;;  %v460_v22 = vpop.f32.mrf.mxu1 }
  0xff   :  { %v461_v31 = vadd.f32 %v460_v22, %v371_v26  ;;  %v381_v38 = vadd.f32 %v380_v21, %v284_v30 }
 0x100   :  { %v462_v24 = vpop.f32.mrf.mxu1 }
 0x101   :  { %v565_v28 = vpop.f32.mrf.mxu0  ;;  %v463_v35 = vadd.f32 %v462_v24, %v373_v29 }
 0x102   :  { %v566_v39 = vadd.f32 %v565_v28, %v461_v31 }
 0x103   :  { %v567_v32 = vpop.f32.mrf.mxu0 }
 0x104   :  { %v469_v33 = vpop.f32.mrf.mxu1  ;;  %v568_v42 = vadd.f32 %v567_v32, %v463_v35 }
 0x105   :  { %v572_v37 = vpop.f32.mrf.mxu0  ;;  %v470_v40 = vadd.f32 %v469_v33, %v379_v34 }
 0x106   :  { %v471_v36 = vpop.f32.mrf.mxu1 }
 0x107   :  { %v472_v43 = vadd.f32 %v471_v36, %v381_v38  ;;  %v574_v45 = vpop.f32.mrf.mxu0  ;;  %v573_v47 = vadd.f32 %v572_v37, %v470_v40 }
 0x108   :  { %v652_v41 = vpop.f32.mrf.mxu1 }
 0x109   :  { %v653_v44 = vadd.f32 %v652_v41, %v566_v39  ;;  %v575_v50 = vadd.f32 %v574_v45, %v472_v43 }
 0x10a   :  { %v654_v46 = vpop.f32.mrf.mxu1 }
 0x10b   :  { %664 = vst [vmem:[#allocation7] sm:$0xff] %v653_v44  ;;  %v655_v48 = vadd.f32 %v654_v46, %v568_v42 }
 0x10c   :  { %v659_v49 = vpop.f32.mrf.mxu1 }
 0x10d   :  { %665 = vst [vmem:[#allocation7 + $0x8] sm:$0xff] %v655_v48  ;;  %v660_v51 = vadd.f32 %v659_v49, %v573_v47 }
 0x10e   :  { %v661_v52 = vpop.f32.mrf.mxu1 }
 0x10f   :  { %666 = vst [vmem:[#allocation7 + $0x10] sm:$0xff] %v660_v51  ;;  %v662_v53 = vadd.f32 %v661_v52, %v575_v50 }
 0x111   :  { %667 = vst [vmem:[#allocation7 + $0x18] sm:$0xff] %v662_v53 }
 0x112   :  { %745 = shalt.err (!%p742_p0)
}
 0x113   :  { %679 = dma.vmem_to_hbm [thread:$0]  %s674_s26, 512, %s947_s3, [#allocation4], %s764_s22, %s764_s22, %s765_s23  }
 0x114   :  { %758 = dma.done.wait [#allocation4], 512  }
 0x115   :  { %759 = vsyncadd [#allocation4], 4294966784 }
 0x116   :  { %683 = vsyncpa [#allocation3], 1 }
 0x117   :  { %684 = vsyncpa [#allocation6], 1 }
 0x118   :  { %685 = vsyncpa [#allocation4], 1 }

</bundles_post_ra>
